<compile_context>
chip_gen: v7x
topology: tpu7x:2x2x1
jax: 0.10.0
libtpu: 0.0.40
codegen_flags: <defaults>
</compile_context>

<pallas_src>
import jax
import jax.numpy as jnp
from jax.experimental import pallas as pl
from jax.experimental.pallas import tpu as pltpu


def outconv_kernel(x_ref, w_ref, b_ref, o_ref):
    # x_ref: (bb, Cin, tm)  w_ref: (Cout, Cin)  b_ref: (Cout, 1)  o_ref: (bb, Cout, tm)
    acc = jnp.einsum("oc,bcm->bom", w_ref[...], x_ref[...],
                     preferred_element_type=jnp.float32)
    o_ref[...] = (acc + b_ref[...][None].astype(jnp.float32)).astype(o_ref.dtype)


def out_conv_1x1(x_nchw, weight, bias, *,
                 vmem_block_budget_bytes=16 << 20,   # double-buffered in+out blocks
                 target_step_bytes=4 << 20):         # HBM traffic per grid step
    """1x1 Conv2d (padding=0), equivalent to nn.Conv2d(Cin, Cout, 1).

    x_nchw: [B, Cin, H, W]   weight: [Cout, Cin, 1, 1]   bias: [Cout]
    returns: [B, Cout, H, W]
    """
    B, Cin, H, W = x_nchw.shape
    Cout = weight.shape[0]
    HW = H * W

    # ---- glue: only free reshapes (no transposes, no pads) ----
    x3d = x_nchw.reshape(B, Cin, HW)        # [B, Cin, HW]  (spatial on lanes)
    w2d = weight.reshape(Cout, Cin)         # [Cout, Cin]
    b2d = bias.reshape(Cout, 1)             # [Cout, 1]     (broadcast over lanes)

    lane = 128
    itemsize = jnp.dtype(x_nchw.dtype).itemsize
    per_col_bytes = (Cin + Cout) * itemsize          # x + out bytes / spatial column / image
    hw128 = pl.cdiv(HW, lane) * lane                 # 128-rounded full image row

    # Spatial tile: as large as possible (fewer grid steps), multiple of 128,
    # capped so 2x (double-buffer) the in+out block stays under the VMEM budget.
    tm_vmem_cap = max(lane,
                      (vmem_block_budget_bytes // (2 * per_col_bytes)) // lane * lane)
    tm_eff = min(hw128, tm_vmem_cap)

    # v7x megacore: with a single image, keep >= 2 spatial blocks when possible.
    if B == 1 and pl.cdiv(HW, tm_eff) < 2 and hw128 > lane:
        tm_eff = max(lane, pl.cdiv(pl.cdiv(HW, 2), lane) * lane)

    n_hw_blocks = pl.cdiv(HW, tm_eff)

    # Batch blocking: if a whole image row fits in one tile and a step still
    # moves few bytes, pack several images per grid step (keeps DMA saturated).
    bb = 1
    if n_hw_blocks == 1 and B > 1:
        step_bytes = per_col_bytes * tm_eff
        bb = max(1, min(B, target_step_bytes // max(step_bytes, 1)))
        bb = max(1, min(bb, vmem_block_budget_bytes // (2 * per_col_bytes * tm_eff)))
        if bb >= B:                       # keep >= 2 batch blocks for v7x megacore
            bb = pl.cdiv(B, 2)

    grid = (pl.cdiv(B, bb), n_hw_blocks)

    flops = 2 * B * Cout * Cin * HW
    bytes_accessed = (itemsize * (B * Cin * HW + B * Cout * HW)
                      + 4 * Cout * Cin + 4 * Cout)

    out3d = pl.pallas_call(
        outconv_kernel,
        out_shape=jax.ShapeDtypeStruct((B, Cout, HW), x_nchw.dtype),
        grid_spec=pltpu.PrefetchScalarGridSpec(
            num_scalar_prefetch=0,
            grid=grid,
            in_specs=[
                # x tile: (bb, Cin, tm_eff), lane-dense along spatial
                pl.BlockSpec((bb, Cin, tm_eff), lambda b, i: (b, 0, i)),
                # full weight / bias, resident across the grid
                pl.BlockSpec((Cout, Cin), lambda b, i: (0, 0)),
                pl.BlockSpec((Cout, 1), lambda b, i: (0, 0)),
            ],
            out_specs=pl.BlockSpec((bb, Cout, tm_eff), lambda b, i: (b, 0, i)),
        ),
        compiler_params=pltpu.CompilerParams(
            dimension_semantics=("parallel", "parallel"),
            vmem_limit_bytes=32 << 20),
        cost_estimate=pl.CostEstimate(
            flops=flops, transcendentals=0, bytes_accessed=bytes_accessed),
    )(x3d, w2d, b2d)

    return out3d.reshape(B, Cout, H, W)


def reference_out_conv(x_nchw, weight, bias):
    # Pure-JAX reference: 1x1 conv == einsum over channel axis.
    w2d = weight.reshape(weight.shape[0], weight.shape[1])  # [Cout, Cin]
    y = jnp.einsum("bchw,oc->bohw", x_nchw, w2d) + bias[None, :, None, None]
    return y.astype(x_nchw.dtype)


if __name__ == "__main__":
    key = jax.random.PRNGKey(0)
    B, Cin, Cout, H, W = 2, 4, 3, 16, 16

    kx, kw, kb = jax.random.split(key, 3)
    x = jax.random.normal(kx, (B, Cin, H, W), dtype=jnp.float32)

    # Deterministic parameter init (mimics PyTorch's uniform(-1/sqrt(fan_in), +1/sqrt(fan_in)))
    fan_in = Cin * 1 * 1
    bound = 1.0 / (fan_in ** 0.5)
    weight = jax.random.uniform(kw, (Cout, Cin, 1, 1), jnp.float32, -bound, bound)
    bias = jax.random.uniform(kb, (Cout,), jnp.float32, -bound, bound)

    out = out_conv_1x1(x, weight, bias)
    out = jax.block_until_ready(out)

    ref = reference_out_conv(x, weight, bias)
    assert out.shape == (B, Cout, H, W)
    assert jnp.allclose(out, ref, atol=1e-5, rtol=1e-5), "mismatch vs reference"

    print("KERNEL_OK")
</pallas_src>

<mosaic_0001>
module attributes {stable_mosaic.version = 11 : i64} {
  func.func @outconv_kernel(%arg0: i32, %arg1: i32, %arg2: memref<1x4x256xf32, #tpu.memory_space<vmem>>, %arg3: memref<3x4xf32, #tpu.memory_space<vmem>>, %arg4: memref<3x1xf32, #tpu.memory_space<vmem>>, %arg5: memref<1x3x256xf32, #tpu.memory_space<vmem>>) attributes {dimension_semantics = [#tpu.dimension_semantics<parallel>, #tpu.dimension_semantics<parallel>], iteration_bounds = array<i64: 2, 1>, scalar_prefetch = 0 : i64, scratch_operands = 0 : i64, tpu.core_type = #tpu.core_type<tc>, window_params = [{transform_indices = @transform_0, window_bounds = array<i64: 1, 4, 256>}, {pipeline_mode = #tpu.pipeline_mode<synchronous>, transform_indices = @transform_1, window_bounds = array<i64: 3, 4>}, {pipeline_mode = #tpu.pipeline_mode<synchronous>, transform_indices = @transform_2, window_bounds = array<i64: 3, 1>}, {transform_indices = @transform_3, window_bounds = array<i64: 1, 3, 256>}]} {
    %c0 = arith.constant 0 : index
    %c0_0 = arith.constant 0 : index
    %0 = vector.load %arg3[%c0, %c0_0] : memref<3x4xf32, #tpu.memory_space<vmem>>, vector<3x4xf32>
    %c0_1 = arith.constant 0 : index
    %c0_2 = arith.constant 0 : index
    %c0_3 = arith.constant 0 : index
    %1 = vector.load %arg2[%c0_1, %c0_2, %c0_3] : memref<1x4x256xf32, #tpu.memory_space<vmem>>, vector<1x4x256xf32>
    "tpu.trace_start"() <{level = 10 : i32, message = "oc,bcm->bom"}> : () -> ()
    %cst = arith.constant dense<0.000000e+00> : vector<1x256x3xf32>
    %2 = tpu.matmul %1, %0, %cst {dimension_numbers = #tpu.dot_dimension_numbers<[1], [1], [0, 2], [0], [0, 0, 0, 2, 1, 0], [], []>} : vector<1x4x256xf32>, vector<3x4xf32>, vector<1x256x3xf32> -> vector<1x256x3xf32>
    %3 = tpu.transpose %2, [0, 2, 1] : vector<1x256x3xf32> -> vector<1x3x256xf32>
    "tpu.trace_stop"() : () -> ()
    %c0_4 = arith.constant 0 : index
    %c0_5 = arith.constant 0 : index
    %4 = vector.load %arg4[%c0_4, %c0_5] : memref<3x1xf32, #tpu.memory_space<vmem>>, vector<3x1xf32>
    %5 = vector.shape_cast %4 : vector<3x1xf32> to vector<1x3x1xf32>
    %6 = vector.broadcast %5 : vector<1x3x1xf32> to vector<1x3x256xf32>
    %7 = arith.addf %3, %6 : vector<1x3x256xf32>
    %c0_6 = arith.constant 0 : index
    %c0_7 = arith.constant 0 : index
    %c0_8 = arith.constant 0 : index
    %8 = vector.load %arg5[%c0_6, %c0_7, %c0_8] : memref<1x3x256xf32, #tpu.memory_space<vmem>>, vector<1x3x256xf32>
    tpu.vector_store %arg5[%c0_6, %c0_7, %c0_8], %7 {strides = array<i32>} : memref<1x3x256xf32, #tpu.memory_space<vmem>>, vector<1x3x256xf32>,
    return
  }
  func.func @transform_0(%arg0: i32, %arg1: i32) -> (i32, i32, i32) {
    %c0_i32 = arith.constant 0 : i32
    %c0_i32_0 = arith.constant 0 : i32
    return %arg0, %c0_i32, %arg1 : i32, i32, i32
  }
  func.func @transform_1(%arg0: i32, %arg1: i32) -> (i32, i32) {
    %c0_i32 = arith.constant 0 : i32
    %c0_i32_0 = arith.constant 0 : i32
    %c0_i32_1 = arith.constant 0 : i32
    return %c0_i32, %c0_i32_0 : i32, i32
  }
  func.func @transform_2(%arg0: i32, %arg1: i32) -> (i32, i32) {
    %c0_i32 = arith.constant 0 : i32
    %c0_i32_0 = arith.constant 0 : i32
    %c0_i32_1 = arith.constant 0 : i32
    return %c0_i32, %c0_i32_0 : i32, i32
  }
  func.func @transform_3(%arg0: i32, %arg1: i32) -> (i32, i32, i32) {
    %c0_i32 = arith.constant 0 : i32
    %c0_i32_0 = arith.constant 0 : i32
    return %arg0, %c0_i32, %arg1 : i32, i32, i32
  }
}

</mosaic_0001>

<bundles_post_ra>
// kernel: tpu_custom_call.1
= control target key start
LH: loop header
LB: loop body
LE: loop exit
PB: predicated region body
PF: predicated region fallthrough
CT: control target
= control target key end

     0   :  { %8 = vsyncpa [#allocation3], 0  ;;  %s1247_s0 = inlined_call_operand.hbm [shape: f32[2,4,256], index: 0, kind: input, shape index: {}]   ;;  %s1248_s1 = inlined_call_operand.vmem [shape: f32[3,4], index: 1, kind: input, shape index: {}]   ;;  %s1249_s2 = inlined_call_operand.vmem [shape: f32[3,1], index: 2, kind: input, shape index: {}]   ;;  %s1250_s3 = inlined_call_operand.vmem [shape: f32[2,3,256], index: 3, kind: output, shape index: {}]  }
   0x1   :  { %10 = vsyncpa [#allocation3 + $0x1], 0  ;;  %s1080_s12 = smov 0   ;;  %s1082_s13 = smov 0  }
   0x2   :  { %s1084_s14 = smov 0   ;;  %s1086_s15 = smov 0  }
   0x3   :  { %s1088_s16 = smov 0   ;;  %s1090_s17 = smov 0  }
   0x4 LB: > { %s783_s18 = sadd.s32 4294967295, %s1056_s17   ;;  %s28_s19 = sadd.s32 1, %s1052_s16  ;;  %s1056_s17 = sphi %s1090_s17, %s16_s17   ;;  %s1052_s16 = sphi %s1088_s16, %s1260_s16   ;;  %s1048_s15 = sphi %s1086_s15, %s1259_s15   ;;  %s1044_s14 = sphi %s1084_s14, %s1258_s14   ;;  %s1040_s13 = sphi %s1082_s13, %s1257_s13   ;;  %s1036_s12 = sphi %s1080_s12, %s1256_s12  }
   0x5   : > { %p30_p0 = scmp.ge.s32.totalorder %s28_s19, 2  ;;  %s37_s20 = sadd.s32 1, %s1044_s14 }
   0x6   : > { %p44_p1 = scmp.ne.s32.totalorder %s1044_s14, %s1040_s13  ;;  %p45_p2 = scmp.eq.s32.totalorder %s1056_s17, 0 }
   0x7   : > { %s1262_s19 = smov (%p30_p0, %s28_s19), 0  ;;  %p50_p4 = scmp.ne.s32.totalorder %s1040_s13, %s1036_s12 }
   0x8   : > { %p1116_p3 = por %p45_p2, %p44_p1  ;;  %s32_s22 = ssub.s32 %s1052_s16, %s1262_s19 }
   0x9   : > { %p51_p5 = scmp.eq.s32.totalorder %s783_s18, 0  ;;  %p35_p6 = scmp.eq.s32.totalorder %s32_s22, 0 }
   0xa   : > { %p922_p8 = scmp.lt.s32.totalorder %s1056_s17, 2  ;;  %s150_s25 = sand.u32 1, %s1044_s14  }
   0xb   : > { %p1123_p7 = por %p51_p5, %p50_p4  ;;  %s829_s26 = sshll.u32 %s1052_s16, 7 }
   0xc   : > { %s1129_s24 = scalar_select %p35_p6, %s1044_s14, %s37_s20  }
   0xd   : > { %s787_s27 = sshll.u32 %s150_s25, 3  ;;  %s1136_s30 = scalar_lea.hbm %s1247_s0, %s829_s26 }
   0xe   : > { %s154_s4 = scalar_lea.vmem [#allocation2], %s787_s27  ;;  %p1140_p9 = pnand %p922_p8, %p1116_p3 }
   0xf   : > { %s164_s5 = sshll.u32 %s154_s4, 4  ;;  %s151_s7 = scalar_lea.sflag [#allocation3], %s150_s25  ;;  %s1144_s5 = int_to_ptr.vmem [resolvable:$true] %s164_s5 }
  0x10   : > { %s976_s8 = scalar_lea.hbm %s1136_s30, 128  ;;  %p978_p13 = pneg %p1140_p9 }
  0x11   : > { %p977_p12 = scmp.ne.s32.totalorder %s1136_s30, %s976_s8  ;;  %s981_s11 = scalar_lea.hbm %s1247_s0, 256 }
  0x12   : > { %p982_p2 = scmp.lt.u32.totalorder %s1136_s30, %s1247_s0  ;;  %p983_p3 = scmp.lt.u32.totalorder %s981_s11, %s976_s8 }
  0x13   : > { %p979_p0 = pnand %p978_p13, %p977_p12  ;;  %p985_p5 = scmp.lt.u32.totalorder %s976_s8, %s1136_s30 }
  0x14   : > { %p984_p4 = por %p983_p3, %p982_p2 }
  0x15   : > { %p980_p1 = pneg %p979_p0 }
  0x16   : > { %p986_p6 = por %p985_p5, %p984_p4 }
  0x18   : > { %p987_p8 = pnand %p986_p6, %p980_p1 }
  0x1a   : > { %990 = shalt.err (!%p987_p8)
}
  0x1b   : > { %s991_s20 = scalar_lea.vmem %s1144_s5, 128  ;;  %s1058_s21 = smov [#allocation2]  }
  0x1c   : > { %p992_p12 = scmp.ne.s32.totalorder %s1144_s5, %s991_s20  ;;  %s996_s22 = sshll.u32 %s1058_s21, 4  ;;  %s997_s22 = int_to_ptr.vmem [resolvable:$false] %s996_s22 }
  0x1d   : > { %s998_s25 = scalar_lea.vmem %s997_s22, 256  ;;  %p999_p11 = scmp.lt.s32.totalorder %s1144_s5, %s997_s22 }
  0x1e   : > { %p994_p0 = pnand %p992_p12, %p978_p13  ;;  %p1000_p2 = scmp.lt.s32.totalorder %s998_s25, %s991_s20 }
  0x20   : > { %p995_p10 = pneg %p994_p0  ;;  %p1001_p3 = por %p1000_p2, %p999_p11 }
  0x22   : > { %p1002_p4 = pnand %p1001_p3, %p995_p10 }
  0x24   : > { %1005 = shalt.err (!%p1002_p4)
}
  0x25   : > { %921 = dma.hbm_to_vmem [thread:$0]  (!%p1140_p9), %s1136_s30, 128, %s1144_s5, %s151_s7  }
  0x26   : > { %p1254_p1 = scmp.lt.s32.totalorder %s1056_s17, 3  ;;  %p1255_p5 = scmp.ge.s32.totalorder %s1056_s17, 1 }
  0x28   : > { %p170_p13 = pnand %p1255_p5, %p1254_p1 }
  0x29   : > { %s175_s26 = sand.u32 (!%p170_p13), 1, %s1040_s13  }
  0x2a   : > { %173 = sbr.rel (%p170_p13) target bundleno = 621 (0x26d), region = 32  ;;  %s791_s27 = sshll.u32 (!%p170_p13), %s175_s26, 3 }
  0x2b   : > { %s176_s28 = scalar_lea.sflag (!%p170_p13), [#allocation3], %s175_s26  ;;  %s179_s29 = scalar_lea.vmem (!%p170_p13), [#allocation2], %s791_s27 }
  0x31   : > { %1031 = dma.done.wait (%p1123_p7), %s176_s28, 128  }
  0x32   : > { %1033 = vsyncadd (%p1123_p7), %s176_s28, 4294967168  ;;  %v218_v0 = vld [vmem:[%s179_s29] sm:$0xff]  ;;  %vm286_vm0 = vcmask 31744   ;;  %v1059_v60 = vmov 0   ;;  %p208_p7 = scmp.lt.s32.totalorder %s1048_s15, 1 }
  0x33   : > { %222 = vxpose.xlu0.b32.start.end [1/1] (short) %v218_v0, 128  ;;  %v217_v1 = vld [vmem:[%s1248_s1] sm:$0x7]  ;;  %v220_v2 = vcombine.high %v218_v0, %v218_v0 }
  0x34   : > { %864 = vmatprep.subr.msk.mxu0 %vm286_vm0, %v217_v1  ;;  %914 = vmatprep.subr.msk.mxu1 %vm286_vm0, %v217_v1  ;;  %v675_v59 = vld [vmem:[%s1249_s2] sm:$0x7]  ;;  %s1264_s15 = smov (!%p208_p7, %s1048_s15), 1 }
  0x35   : > { %865 = vmatpush3.xpose.msk.msra.mxu0 %vm286_vm0, %v217_v1  ;;  %915 = vmatpush3.xpose.msk.msra.mxu1 %vm286_vm0, %v217_v1  ;;  %s830_s5 = sshll.u32 %s1264_s15, 3 }
  0x36   : > { %s215_s9 = scalar_lea.vmem %s1250_s3, %s830_s5 }
  0x70   : > { %254 = vxpose.xlu0.b32.start.end [1/1] (short) %v220_v2, 128 }
  0xb3   : > { %v238_v3 = vpop.trf.xlu0 }
  0xb4   : > { %866 = vmatprep.mubr.msk.f32.mxu0 %vm286_vm0, %v238_v3 }
  0xb7   : > { %v239_v4 = vpop.trf.xlu0 }
  0xb8   : > { %867 = vmatmul.mubr.msk.f32.vlgmr.msra.gmra.mrb[0].mxu0 %vm286_vm0, %v239_v4 }
  0xbb   : > { %v240_v5 = vpop.trf.xlu0 }
  0xbc   : > { %869 = vmatprep.mubr.msk.f32.mxu0 %vm286_vm0, %v240_v5 }
  0xbf   : > { %v241_v6 = vpop.trf.xlu0 }
  0xc0   : > { %870 = vmatmul.mubr.msk.f32.gmra.mrb[2].mxu0 %vm286_vm0, %v241_v6 }
  0xc3   : > { %v242_v7 = vpop.trf.xlu0 }
  0xc4   : > { %872 = vmatprep.mubr.msk.f32.mxu0 %vm286_vm0, %v242_v7 }
  0xc7   : > { %v243_v8 = vpop.trf.xlu0 }
  0xc8   : > { %873 = vmatmul.mubr.msk.f32.gmra.mrb[4].mxu0 %vm286_vm0, %v243_v8 }
  0xcb   : > { %v244_v9 = vpop.trf.xlu0 }
  0xcc   : > { %875 = vmatprep.mubr.msk.f32.mxu0 %vm286_vm0, %v244_v9 }
  0xcf   : > { %v245_v10 = vpop.trf.xlu0 }
  0xd0   : > { %876 = vmatmul.mubr.msk.f32.gmra.mrb[6].mxu0 %vm286_vm0, %v245_v10 }
  0xd3   : > { %v246_v11 = vpop.trf.xlu0 }
  0xd4   : > { %878 = vmatprep.mubr.msk.f32.mxu0 %vm286_vm0, %v246_v11 }
  0xd7   : > { %v247_v12 = vpop.trf.xlu0 }
  0xd8   : > { %879 = vmatmul.mubr.msk.f32.gmra.mrb[8].mxu0 %vm286_vm0, %v247_v12 }
  0xdb   : > { %v248_v13 = vpop.trf.xlu0 }
  0xdc   : > { %881 = vmatprep.mubr.msk.f32.mxu0 %vm286_vm0, %v248_v13 }
  0xdf   : > { %v249_v14 = vpop.trf.xlu0 }
  0xe0   : > { %882 = vmatmul.mubr.msk.f32.gmra.mrb[10].mxu0 %vm286_vm0, %v249_v14 }
  0xe3   : > { %v250_v15 = vpop.trf.xlu0 }
  0xe4   : > { %884 = vmatprep.mubr.msk.f32.mxu0 %vm286_vm0, %v250_v15 }
  0xe7   : > { %v251_v16 = vpop.trf.xlu0 }
  0xe8   : > { %885 = vmatmul.mubr.msk.f32.gmra.mrb[12].mxu0 %vm286_vm0, %v251_v16 }
  0xeb   : > { %v252_v17 = vpop.trf.xlu0 }
  0xec   : > { %887 = vmatprep.mubr.msk.f32.mxu0 %vm286_vm0, %v252_v17 }
  0xef   : > { %v253_v18 = vpop.trf.xlu0 }
  0xf0   : > { %888 = vmatmul.mubr.msk.f32.gmra.mrb[14].mxu0 %vm286_vm0, %v253_v18 }
  0xf3   : > { %v270_v19 = vpop.trf.xlu0 }
  0xf4   : > { %890 = vmatprep.mubr.msk.f32.mxu1 %vm286_vm0, %v270_v19 }
  0xf7   : > { %v271_v20 = vpop.trf.xlu0 }
  0xf8   : > { %891 = vmatmul.mubr.msk.f32.vlgmr.msra.gmra.mrb[0].mxu1 %vm286_vm0, %v271_v20 }
  0xfb   : > { %v272_v21 = vpop.trf.xlu0 }
  0xfc   : > { %893 = vmatprep.mubr.msk.f32.mxu1 %vm286_vm0, %v272_v21 }
  0xff   : > { %v273_v22 = vpop.trf.xlu0 }
 0x100   : > { %894 = vmatmul.mubr.msk.f32.gmra.mrb[2].mxu1 %vm286_vm0, %v273_v22 }
 0x103   : > { %v274_v23 = vpop.trf.xlu0 }
 0x104   : > { %896 = vmatprep.mubr.msk.f32.mxu1 %vm286_vm0, %v274_v23 }
 0x107   : > { %v275_v24 = vpop.trf.xlu0 }
 0x108   : > { %897 = vmatmul.mubr.msk.f32.gmra.mrb[4].mxu1 %vm286_vm0, %v275_v24 }
 0x10b   : > { %v276_v25 = vpop.trf.xlu0 }
 0x10c   : > { %899 = vmatprep.mubr.msk.f32.mxu1 %vm286_vm0, %v276_v25 }
 0x10f   : > { %v277_v26 = vpop.trf.xlu0 }
 0x110   : > { %900 = vmatmul.mubr.msk.f32.gmra.mrb[6].mxu1 %vm286_vm0, %v277_v26 }
 0x113   : > { %v278_v27 = vpop.trf.xlu0 }
 0x114   : > { %902 = vmatprep.mubr.msk.f32.mxu1 %vm286_vm0, %v278_v27 }
 0x117   : > { %v279_v28 = vpop.trf.xlu0 }
 0x118   : > { %903 = vmatmul.mubr.msk.f32.gmra.mrb[8].mxu1 %vm286_vm0, %v279_v28 }
 0x11b   : > { %v280_v29 = vpop.trf.xlu0 }
 0x11c   : > { %905 = vmatprep.mubr.msk.f32.mxu1 %vm286_vm0, %v280_v29 }
 0x11f   : > { %v281_v30 = vpop.trf.xlu0 }
 0x120   : > { %906 = vmatmul.mubr.msk.f32.gmra.mrb[10].mxu1 %vm286_vm0, %v281_v30 }
 0x123   : > { %v282_v31 = vpop.trf.xlu0 }
 0x124   : > { %908 = vmatprep.mubr.msk.f32.mxu1 %vm286_vm0, %v282_v31 }
 0x127   : > { %v283_v32 = vpop.trf.xlu0 }
 0x128   : > { %909 = vmatmul.mubr.msk.f32.gmra.mrb[12].mxu1 %vm286_vm0, %v283_v32 }
 0x12b   : > { %v284_v33 = vpop.trf.xlu0 }
 0x12c   : > { %911 = vmatprep.mubr.msk.f32.mxu1 %vm286_vm0, %v284_v33 }
 0x12f   : > { %v285_v34 = vpop.trf.xlu0 }
 0x130   : > { %912 = vmatmul.mubr.msk.f32.gmra.mrb[14].mxu1 %vm286_vm0, %v285_v34 }
 0x18b   : > { %v868_v35 = vpop.f32.mrb[0].mxu0 }
 0x18c   : > { %v452_v36 = vpop.f32.mrb[1].mxu0 }
 0x18d   : > { %611 = vxpose.xlu1.b32.start [1/16] (narrow) %v452_v36, 8 }
 0x191   : > { %612 = vxpose.xlu1.b32.cont [2/16] (narrow) %v868_v35, 8 }
 0x193   : > { %v871_v37 = vpop.f32.mrb[2].mxu0 }
 0x194   : > { %v462_v38 = vpop.f32.mrb[3].mxu0 }
 0x195   : > { %613 = vxpose.xlu1.b32.cont [3/16] (narrow) %v462_v38, 8 }
 0x199   : > { %614 = vxpose.xlu1.b32.cont [4/16] (narrow) %v871_v37, 8 }
 0x19b   : > { %v874_v39 = vpop.f32.mrb[4].mxu0 }
 0x19c   : > { %v472_v40 = vpop.f32.mrb[5].mxu0 }
 0x19d   : > { %615 = vxpose.xlu1.b32.cont [5/16] (narrow) %v472_v40, 8 }
 0x1a1   : > { %616 = vxpose.xlu1.b32.cont [6/16] (narrow) %v874_v39, 8 }
 0x1a3   : > { %v877_v41 = vpop.f32.mrb[6].mxu0 }
 0x1a4   : > { %v482_v42 = vpop.f32.mrb[7].mxu0 }
 0x1a5   : > { %617 = vxpose.xlu1.b32.cont [7/16] (narrow) %v482_v42, 8 }
 0x1a9   : > { %618 = vxpose.xlu1.b32.cont [8/16] (narrow) %v877_v41, 8 }
 0x1ab   : > { %v880_v43 = vpop.f32.mrb[8].mxu0 }
 0x1ac   : > { %v492_v44 = vpop.f32.mrb[9].mxu0 }
 0x1ad   : > { %619 = vxpose.xlu1.b32.cont [9/16] (narrow) %v492_v44, 8 }
 0x1b1   : > { %620 = vxpose.xlu1.b32.cont [10/16] (narrow) %v880_v43, 8 }
 0x1b3   : > { %v883_v45 = vpop.f32.mrb[10].mxu0 }
 0x1b4   : > { %v502_v46 = vpop.f32.mrb[11].mxu0 }
 0x1b5   : > { %621 = vxpose.xlu1.b32.cont [11/16] (narrow) %v502_v46, 8 }
 0x1b9   : > { %622 = vxpose.xlu1.b32.cont [12/16] (narrow) %v883_v45, 8 }
 0x1bb   : > { %v886_v47 = vpop.f32.mrb[12].mxu0 }
 0x1bc   : > { %v512_v48 = vpop.f32.mrb[13].mxu0 }
 0x1bd   : > { %623 = vxpose.xlu1.b32.cont [13/16] (narrow) %v512_v48, 8 }
 0x1c1   : > { %624 = vxpose.xlu1.b32.cont [14/16] (narrow) %v886_v47, 8 }
 0x1c3   : > { %v889_v49 = vpop.f32.mrb[14].mxu0 }
 0x1c4   : > { %v522_v50 = vpop.f32.mrb[15].mxu0 }
 0x1c5   : > { %625 = vxpose.xlu1.b32.cont [15/16] (narrow) %v522_v50, 8 }
 0x1c9   : > { %626 = vxpose.xlu1.b32.end [16/16] (narrow) %v889_v49, 8 }
 0x1cb   : > { %v892_v51 = vpop.f32.mrb[0].mxu1 }
 0x1cc   : > { %v532_v52 = vpop.f32.mrb[1].mxu1 }
 0x1cd   : > { %643 = vxpose.xlu0.b32.start [1/16] (narrow) %v532_v52, 8 }
 0x1d1   : > { %644 = vxpose.xlu0.b32.cont [2/16] (narrow) %v892_v51, 8 }
 0x1d3   : > { %v895_v53 = vpop.f32.mrb[2].mxu1 }
 0x1d4   : > { %v542_v54 = vpop.f32.mrb[3].mxu1 }
 0x1d5   : > { %645 = vxpose.xlu0.b32.cont [3/16] (narrow) %v542_v54, 8 }
 0x1d9   : > { %646 = vxpose.xlu0.b32.cont [4/16] (narrow) %v895_v53, 8 }
 0x1db   : > { %v898_v55 = vpop.f32.mrb[4].mxu1 }
 0x1dc   : > { %v552_v56 = vpop.f32.mrb[5].mxu1 }
 0x1dd   : > { %647 = vxpose.xlu0.b32.cont [5/16] (narrow) %v552_v56, 8 }
 0x1e1   : > { %648 = vxpose.xlu0.b32.cont [6/16] (narrow) %v898_v55, 8 }
 0x1e3   : > { %v901_v57 = vpop.f32.mrb[6].mxu1 }
 0x1e4   : > { %v562_v58 = vpop.f32.mrb[7].mxu1 }
 0x1e5   : > { %649 = vxpose.xlu0.b32.cont [7/16] (narrow) %v562_v58, 8 }
 0x1e7   : > { %973 = vset.pattern.permute.xlu1 %v1059_v60 }
 0x1e8   : > { %678 = vperm.xlu1 %973, %v675_v59  }
 0x1e9   : > { %650 = vxpose.xlu0.b32.cont [8/16] (narrow) %v901_v57, 8 }
 0x1eb   : > { %v904_v61 = vpop.f32.mrb[8].mxu1 }
 0x1ec   : > { %v572_v62 = vpop.f32.mrb[9].mxu1 }
 0x1ed   : > { %651 = vxpose.xlu0.b32.cont [9/16] (narrow) %v572_v62, 8 }
 0x1f1   : > { %652 = vxpose.xlu0.b32.cont [10/16] (narrow) %v904_v61, 8 }
 0x1f3   : > { %v907_v63 = vpop.f32.mrb[10].mxu1 }
 0x1f4   : > { %v582_v0 = vpop.f32.mrb[11].mxu1 }
 0x1f5   : > { %653 = vxpose.xlu0.b32.cont [11/16] (narrow) %v582_v0, 8 }
 0x1f9   : > { %654 = vxpose.xlu0.b32.cont [12/16] (narrow) %v907_v63, 8 }
 0x1fb   : > { %v910_v1 = vpop.f32.mrb[12].mxu1 }
 0x1fc   : > { %v592_v2 = vpop.f32.mrb[13].mxu1 }
 0x1fd   : > { %655 = vxpose.xlu0.b32.cont [13/16] (narrow) %v592_v2, 8 }
 0x201   : > { %656 = vxpose.xlu0.b32.cont [14/16] (narrow) %v910_v1, 8 }
 0x203   : > { %v913_v3 = vpop.f32.mrb[14].mxu1 }
 0x204   : > { %v602_v4 = vpop.f32.mrb[15].mxu1 }
 0x205   : > { %657 = vxpose.xlu0.b32.cont [15/16] (narrow) %v602_v4, 8 }
 0x209   : > { %658 = vxpose.xlu0.b32.end [16/16] (narrow) %v913_v3, 8 }
 0x20d   : > { %v627_v5 = vpop.trf.xlu1 }
 0x232   : > { %974 = vset.pattern.permute.xlu0 %v1059_v60 }
 0x24d   : > { %v659_v6 = vpop.trf.xlu0 }
 0x267   : > { %v679_v7 = vpop.permute.xlu1 %678 }
 0x268   : > { %v681_v8 = vadd.f32 %v679_v7, %v627_v5  ;;  %v682_v9 = vadd.f32 %v679_v7, %v659_v6 }
 0x26a   : > { %v685_v10 = vcombine.low %v681_v8, %v682_v9 }
 0x26c   : > { %687 = vst [vmem:[%s215_s9] sm:$0x77] %v685_v10 }
 0x26d PF: > { %s16_s17 = sadd.s32 1, %s1056_s17   ;;  %s1256_s12 = smov %s1040_s13 }
 0x26e   : > { %p13_p9 = scmp.ge.s32.totalorder %s16_s17, 4   ;;  %s1257_s13 = smov %s1044_s14 }
 0x26f   : > { %s1258_s14 = smov %s1129_s24  ;;  %s1259_s15 = smov %s1052_s16 }
 0x270   : > { %s1260_s16 = smov %s1262_s19  ;;  %15 = sbr.rel (!%p13_p9) target bundleno = 4 (0x4), region = 72 }
 0x277   :  { %718 = vsyncpa [#allocation3], 1 }
 0x278   :  { %720 = vsyncpa [#allocation3 + $0x1], 1 }

</bundles_post_ra>
